<compile_context>
chip_gen: v7x
topology: tpu7x:2x2x1
jax: 0.10.0
libtpu: 0.0.40
codegen_flags: <defaults>
</compile_context>

<pallas_src>
import functools

import numpy as np
import jax
import jax.numpy as jnp
from jax.experimental import pallas as pl
from jax.experimental.pallas import tpu as pltpu

# ----------------------------- model config --------------------------------
B = 2            # batch
T = 8            # n_steps
F = 4            # n_features
TP = 4           # n_pred_steps
FP = 4           # n_pred_features
DM = 32          # d_model
WINDOW_SIZE = [16]          # HiPPO order N per window
MULTISCALE = [1, 2]
MODES1 = 4
N = WINDOW_SIZE[0]
N_BR = len(WINDOW_SIZE) * len(MULTISCALE)
MODES2 = min(MODES1, min(TP, T) // 2)   # mode_type == 0 path of SpectralConv1d


# --------------------------- fused Pallas kernel -----------------------------
def _film_fused_kernel(xm_ref, wemb_ref, vecs_ref, gblk_ref, wout_ref, o_ref, *, bblk):
    """One grid step = one batch tile of `bblk` samples, fully resident in VMEM.

    vecs_ref rows: 0 b_emb, 1 affine_w, 2 affine_b, 3 (b_mlp - affine_b),
                   4 (affine_w + 1e-10), 5 b_out (zero-padded to DM lanes), 6-7 pad.
    """
    vecs = vecs_ref[...]
    b_emb = vecs[0:1, :]
    aff_w = vecs[1:2, :]
    aff_b = vecs[2:3, :]
    post_b = vecs[3:4, :]
    aw_eps = vecs[4:5, :]
    b_out = vecs[5:6, :FP]

    # 1) SaitsEmbedding: Linear(concat([X, mask], -1)) for the whole batch tile
    xm = xm_ref[...].reshape(bblk * T, 2 * F)
    emb = jnp.dot(xm, wemb_ref[...], preferred_element_type=jnp.float32) + b_emb

    # 2) RevIN normalization (per-sample mean / biased var over time + affine)
    emb3 = emb.reshape(bblk, T, DM)
    mu = jnp.mean(emb3, axis=1, keepdims=True)                # (bblk, 1, DM)
    xc = emb3 - mu
    var = jnp.mean(xc * xc, axis=1, keepdims=True)            # unbiased=False
    sd = jnp.sqrt(var + 1e-5)
    x_enc = ((xc / sd) * aff_w + aff_b).reshape(bblk * T, DM)

    # 3) HiPPO-LegT scan + SpectralConv1d + Legendre decode + branch mixing,
    #    all folded host-side into one block-diagonal matrix:  acc = G_blk @ x_enc.
    acc = jnp.dot(gblk_ref[...], x_enc, preferred_element_type=jnp.float32)  # (bblk*T, DM)

    # 4) (+mlp bias, -affine_bias) / (affine_w + 1e-10), then de-normalize
    x = (acc.reshape(bblk, T, DM) + post_b) / aw_eps
    x = (x * sd + mu).reshape(bblk * T, DM)

    # 5) output projection Linear(d_model -> n_pred_features); rows >= TP per
    #    sample are padding and are dropped in the wrapper.
    o_ref[0] = jnp.dot(x, wout_ref[...], preferred_element_type=jnp.float32) + b_out


# --------------------------- parameter setup --------------------------------
def _legendre_eval(n, x):
    x = np.asarray(x, dtype=np.float64)
    P = np.zeros((x.shape[0], n), dtype=np.float64)
    P[:, 0] = 1.0
    if n > 1:
        P[:, 1] = x
    for k in range(1, n - 1):
        P[:, k + 1] = ((2 * k + 1) * x * P[:, k] - k * P[:, k - 1]) / (k + 1)
    return P


def _hippo_legt(n, dt):
    # transition('lmu', N) + bilinear discretization (scipy cont2discrete)
    Q = np.arange(n, dtype=np.float64)
    R = (2 * Q + 1)[:, None]
    j, i = np.meshgrid(Q, Q)
    A = np.where(i < j, -1.0, (-1.0) ** (i - j + 1)) * R
    Bm = ((-1.0) ** Q[:, None]) * R                         # (N, 1)
    I = np.eye(n)
    M = I - (dt / 2.0) * A
    Ad = np.linalg.solve(M, I + (dt / 2.0) * A)
    Bd = np.linalg.solve(M, dt * Bm)                        # (N, 1)
    vals = np.arange(0.0, 1.0, dt)
    eval_matrix = _legendre_eval(n, 1.0 - 2.0 * vals)       # (len(vals), N)
    return Ad, Bd, eval_matrix


def build_params(key):
    keys = jax.random.split(key, 8)
    scale = 1.0 / (N * N)
    params = {
        "w_emb": (jax.random.normal(keys[0], (2 * F, DM)) * 0.05).astype(jnp.float32),
        "b_emb": (jax.random.normal(keys[1], (1, DM)) * 0.05).astype(jnp.float32),
        "affine_w": jnp.ones((1, DM), jnp.float32),          # torch init: ones
        "affine_b": jnp.zeros((1, DM), jnp.float32),         # torch init: zeros
        "spec_wr": (jax.random.uniform(keys[2], (N_BR, N, N, MODES2)) * scale).astype(jnp.float32),
        "spec_wi": (jax.random.uniform(keys[3], (N_BR, N, N, MODES2)) * scale).astype(jnp.float32),
        "w_mlp": (jax.random.normal(keys[4], (N_BR,)) * 0.5).astype(jnp.float32),
        "b_mlp": (jax.random.normal(keys[5], (1, 1)) * 0.1).astype(jnp.float32),
        "w_out": (jax.random.normal(keys[6], (DM, FP)) * 0.05).astype(jnp.float32),
        "b_out": (jax.random.normal(keys[7], (1, FP)) * 0.05).astype(jnp.float32),
    }
    hippo_A, hippo_B, eval_mats = [], [], []
    for i in range(N_BR):
        n_i = WINDOW_SIZE[i // len(MULTISCALE)]
        ms = MULTISCALE[i % len(MULTISCALE)]
        Ad, Bd, Em = _hippo_legt(n_i, 1.0 / TP / ms)
        hippo_A.append(Ad)
        hippo_B.append(Bd)
        eval_mats.append(Em[-TP:, :])
    params["hippo_A"] = jnp.asarray(np.stack(hippo_A), jnp.float32)       # (N_BR, N, N)
    params["hippo_Bcol"] = jnp.asarray(np.stack(hippo_B), jnp.float32)    # (N_BR, N, 1)
    params["eval_mats"] = jnp.asarray(np.stack(eval_mats), jnp.float32)   # (N_BR, TP, N)
    return params


# ------------------------- host-side weight folding --------------------------
def _fold_full_decode(params):
    """Fold SpectralConv1d (rfft -> mode multiply -> irfft sampled at t = TP-1),
    the Legendre eval-matrix projection, the branch-mixing Linear weight AND the
    HiPPO-LegT linear scan into ONE real matrix G of shape (T, T) such that, per
    sample, backbone_pre_denorm = (G @ x_enc)[:TP].  Rows >= TP are zero padding
    (kept so in-kernel reshapes stay 8-sublane aligned).

    Derivation:  c_t = sum_{s<=t} A^(t-s) B f_s, so
        sum_t M_t @ c_t = sum_s (H_s @ B) f_s   with  H_s = M_s + H_{s+1} @ A,
    where M_t is the per-step (TP, N) folded spectral/decode matrix (only MODES2
    frequency modes are nonzero and a single output time sample is consumed, so
    the FFT collapses exactly to a cosine/sine sum).  All in float64."""
    G = np.zeros((T, T), dtype=np.float64)
    p_out = TP - 1                                    # seq_len >= pred_len -> jump_dist = 0
    for i in range(N_BR):
        L = MULTISCALE[i % len(MULTISCALE)] * TP
        wr = np.asarray(params["spec_wr"][i], np.float64)      # (N_in, N_out, MODES2)
        wi = np.asarray(params["spec_wi"][i], np.float64)
        m = np.arange(MODES2, dtype=np.float64)
        cR = np.where(m == 0, 1.0 / L, (2.0 / L) * np.cos(2.0 * np.pi * m * p_out / L))
        cI = np.where(m == 0, 0.0, -(2.0 / L) * np.sin(2.0 * np.pi * m * p_out / L))
        Aw = wr * cR + wi * cI                                  # coeff of Re(x_ft)
        Bw = wr * cI - wi * cR                                  # coeff of Im(x_ft)
        tt = np.arange(L, dtype=np.float64)
        theta = 2.0 * np.pi * m[:, None] * tt[None, :] / L      # (MODES2, L)
        K = (np.einsum("iom,mt->iot", Aw, np.cos(theta))
             - np.einsum("iom,mt->iot", Bw, np.sin(theta)))     # (N_in, N_out, L)
        eval_m = np.asarray(params["eval_mats"][i], np.float64)     # (TP, N_out)
        w_mlp_i = float(np.asarray(params["w_mlp"])[i])
        # per-scan-step decode matrices  M[t] = w_mlp * eval_m @ K[:, :, t].T : (TP, N_in)
        M = w_mlp_i * np.einsum("qo,iot->tqi", eval_m, K)       # (L, TP, N_in)
        Ad = np.asarray(params["hippo_A"][i], np.float64)       # (N, N)
        Bd = np.asarray(params["hippo_Bcol"][i], np.float64)    # (N, 1)
        H = np.zeros((TP, N), dtype=np.float64)
        for s in range(L - 1, -1, -1):                          # backward fold of the scan
            H = M[s] + H @ Ad
            G[:TP, T - L + s] += H @ Bd[:, 0]
    return G


def prepare_folded_weights(params, bblk):
    """Host-side (numpy / float64) weight folding & packing; run once, outside jit."""
    G = _fold_full_decode(params)                               # (T, T)
    g_blk = np.kron(np.eye(bblk), G).astype(np.float32)         # (bblk*T, bblk*T)
    vecs = np.zeros((8, DM), np.float32)
    vecs[0] = np.asarray(params["b_emb"], np.float64)[0]
    vecs[1] = np.asarray(params["affine_w"], np.float64)[0]
    vecs[2] = np.asarray(params["affine_b"], np.float64)[0]
    vecs[3] = (np.asarray(params["b_mlp"], np.float64)
               - np.asarray(params["affine_b"], np.float64))[0]
    vecs[4] = np.asarray(params["affine_w"], np.float64)[0] + 1e-10
    vecs[5, :FP] = np.asarray(params["b_out"], np.float64)[0]
    return {
        "w_emb": jnp.asarray(params["w_emb"], jnp.float32),     # (2F, DM)
        "vecs": jnp.asarray(vecs),                              # (8, DM)
        "g_blk": jnp.asarray(g_blk),                            # (bblk*T, bblk*T)
        "w_out": jnp.asarray(params["w_out"], jnp.float32),     # (DM, FP)
    }


def _pick_n_blocks(batch):
    """2-way parallel grid on 2-TensorCore chips (v7x); single grid step otherwise
    (v5e/v6e: fewest steps wins — 'parallel' buys nothing on 1-TC chips)."""
    try:
        kind = jax.devices()[0].device_kind.lower()
        if "v7" in kind and batch % 2 == 0:
            return 2
    except Exception:
        pass
    return 1


# ------------------------------ forward -------------------------------------
def film_forward(X, missing_mask, folded, *, n_blocks=1):
    Bb = X.shape[0]
    assert Bb % n_blocks == 0
    bblk = Bb // n_blocks
    assert folded["g_blk"].shape == (bblk * T, bblk * T)

    # one (B, T, 2F) operand instead of separate X / mask inputs
    xm = jnp.concatenate([X, missing_mask], axis=-1)

    kernel = functools.partial(_film_fused_kernel, bblk=bblk)
    out = pl.pallas_call(
        kernel,
        grid=(n_blocks,),
        in_specs=[
            pl.BlockSpec((bblk, T, 2 * F), lambda b: (b, 0, 0)),    # [X | mask] batch tile
            pl.BlockSpec((2 * F, DM), lambda b: (0, 0)),            # W_emb (whole)
            pl.BlockSpec((8, DM), lambda b: (0, 0)),                # packed row vectors
            pl.BlockSpec((bblk * T, bblk * T), lambda b: (0, 0)),   # folded scan/decode matrix
            pl.BlockSpec((DM, FP), lambda b: (0, 0)),               # W_out
        ],
        out_specs=pl.BlockSpec((1, bblk * T, FP), lambda b: (b, 0, 0)),
        out_shape=jax.ShapeDtypeStruct((n_blocks, bblk * T, FP), jnp.float32),
        compiler_params=pltpu.CompilerParams(dimension_semantics=("parallel",)),
    )(xm, folded["w_emb"], folded["vecs"], folded["g_blk"], folded["w_out"])

    # rows [TP:T) per sample are padding from the folded matrix; drop them.
    # final [:, :, :FP] mirrors the module's [:, :, :n_pred_features].
    forecasting = out.reshape(Bb, T, FP)[:, :TP, :FP]
    return forecasting
    # TODO(synk): training_loss / validation_metric (calc_criterion branch) are not
    # part of the forward kernel; only the 'forecasting' output is produced.


# -------------------------------- main ---------------------------------------
if __name__ == "__main__":
    key = jax.random.PRNGKey(0)
    pkey, xkey, mkey = jax.random.split(key, 3)
    params = build_params(pkey)
    X = jax.random.normal(xkey, (B, T, F), dtype=jnp.float32)
    missing_mask = (jax.random.uniform(mkey, (B, T, F)) > 0.3).astype(jnp.float32)

    n_blocks = _pick_n_blocks(B)
    folded = prepare_folded_weights(params, B // n_blocks)   # one-time host-side fold

    fwd = jax.jit(functools.partial(film_forward, n_blocks=n_blocks))
    forecasting = fwd(X, missing_mask, folded)
    forecasting = jax.block_until_ready(forecasting)

    assert forecasting.shape == (B, TP, FP), forecasting.shape
    assert bool(jnp.all(jnp.isfinite(forecasting)))
    print("KERNEL_OK")
</pallas_src>

<mosaic_0001>
module attributes {stable_mosaic.version = 11 : i64} {
  func.func @_film_fused_kernel(%arg0: i32, %arg1: memref<2x8x8xf32, #tpu.memory_space<vmem>>, %arg2: memref<8x32xf32, #tpu.memory_space<vmem>>, %arg3: memref<8x32xf32, #tpu.memory_space<vmem>>, %arg4: memref<16x16xf32, #tpu.memory_space<vmem>>, %arg5: memref<32x4xf32, #tpu.memory_space<vmem>>, %arg6: memref<1x16x4xf32, #tpu.memory_space<vmem>>) attributes {dimension_semantics = [#tpu.dimension_semantics<parallel>], iteration_bounds = array<i64: 1>, scalar_prefetch = 0 : i64, scratch_operands = 0 : i64, tpu.core_type = #tpu.core_type<tc>, window_params = [{transform_indices = @transform_0, window_bounds = array<i64: 2, 8, 8>}, {pipeline_mode = #tpu.pipeline_mode<synchronous>, transform_indices = @transform_1, window_bounds = array<i64: 8, 32>}, {pipeline_mode = #tpu.pipeline_mode<synchronous>, transform_indices = @transform_2, window_bounds = array<i64: 8, 32>}, {pipeline_mode = #tpu.pipeline_mode<synchronous>, transform_indices = @transform_3, window_bounds = array<i64: 16, 16>}, {pipeline_mode = #tpu.pipeline_mode<synchronous>, transform_indices = @transform_4, window_bounds = array<i64: 32, 4>}, {transform_indices = @transform_5, window_bounds = array<i64: 1, 16, 4>}]} {
    %c0 = arith.constant 0 : index
    %c0_0 = arith.constant 0 : index
    %0 = vector.load %arg3[%c0, %c0_0] : memref<8x32xf32, #tpu.memory_space<vmem>>, vector<8x32xf32>
    %1 = vector.extract_strided_slice %0 {offsets = [0, 0], sizes = [1, 32], strides = [1, 1]} : vector<8x32xf32> to vector<1x32xf32>
    %2 = vector.extract_strided_slice %0 {offsets = [1, 0], sizes = [1, 32], strides = [1, 1]} : vector<8x32xf32> to vector<1x32xf32>
    %3 = vector.extract_strided_slice %0 {offsets = [2, 0], sizes = [1, 32], strides = [1, 1]} : vector<8x32xf32> to vector<1x32xf32>
    %4 = vector.extract_strided_slice %0 {offsets = [3, 0], sizes = [1, 32], strides = [1, 1]} : vector<8x32xf32> to vector<1x32xf32>
    %5 = vector.extract_strided_slice %0 {offsets = [4, 0], sizes = [1, 32], strides = [1, 1]} : vector<8x32xf32> to vector<1x32xf32>
    %6 = vector.extract_strided_slice %0 {offsets = [5, 0], sizes = [1, 4], strides = [1, 1]} : vector<8x32xf32> to vector<1x4xf32>
    %c0_1 = arith.constant 0 : index
    %c0_2 = arith.constant 0 : index
    %c0_3 = arith.constant 0 : index
    %7 = vector.load %arg1[%c0_1, %c0_2, %c0_3] : memref<2x8x8xf32, #tpu.memory_space<vmem>>, vector<2x8x8xf32>
    %8 = vector.shape_cast %7 : vector<2x8x8xf32> to vector<16x8xf32>
    %c0_4 = arith.constant 0 : index
    %c0_5 = arith.constant 0 : index
    %9 = vector.load %arg2[%c0_4, %c0_5] : memref<8x32xf32, #tpu.memory_space<vmem>>, vector<8x32xf32>
    %cst = arith.constant dense<0.000000e+00> : vector<16x32xf32>
    %10 = tpu.matmul %8, %9, %cst {dimension_numbers = #tpu.dot_dimension_numbers<[1], [0], [0], [1], [0, 0, 1, 1], [], []>} : vector<16x8xf32>, vector<8x32xf32>, vector<16x32xf32> -> vector<16x32xf32>
    %11 = vector.broadcast %1 : vector<1x32xf32> to vector<16x32xf32>
    %12 = arith.addf %10, %11 : vector<16x32xf32>
    %13 = vector.shape_cast %12 : vector<16x32xf32> to vector<2x8x32xf32>
    %cst_6 = arith.constant dense<0.000000e+00> : vector<2x32xf32>
    %14 = vector.multi_reduction <add>, %13, %cst_6 [1] : vector<2x8x32xf32> to vector<2x32xf32>
    %15 = vector.shape_cast %14 : vector<2x32xf32> to vector<2x1x32xf32>
    %cst_7 = arith.constant 8.000000e+00 : f32
    %16 = vector.broadcast %cst_7 : f32 to vector<2x1x32xf32>
    %17 = arith.divf %15, %16 : vector<2x1x32xf32>
    %18 = vector.broadcast %17 : vector<2x1x32xf32> to vector<2x8x32xf32>
    %19 = arith.subf %13, %18 : vector<2x8x32xf32>
    %20 = arith.mulf %19, %19 : vector<2x8x32xf32>
    %cst_8 = arith.constant dense<0.000000e+00> : vector<2x32xf32>
    %21 = vector.multi_reduction <add>, %20, %cst_8 [1] : vector<2x8x32xf32> to vector<2x32xf32>
    %22 = vector.shape_cast %21 : vector<2x32xf32> to vector<2x1x32xf32>
    %cst_9 = arith.constant 8.000000e+00 : f32
    %23 = vector.broadcast %cst_9 : f32 to vector<2x1x32xf32>
    %24 = arith.divf %22, %23 : vector<2x1x32xf32>
    %cst_10 = arith.constant 9.99999974E-6 : f32
    %25 = vector.broadcast %cst_10 : f32 to vector<2x1x32xf32>
    %26 = arith.addf %24, %25 : vector<2x1x32xf32>
    %27 = math.sqrt %26 : vector<2x1x32xf32>
    %28 = vector.broadcast %27 : vector<2x1x32xf32> to vector<2x8x32xf32>
    %29 = arith.divf %19, %28 : vector<2x8x32xf32>
    %30 = vector.shape_cast %2 : vector<1x32xf32> to vector<1x1x32xf32>
    %31 = vector.broadcast %30 : vector<1x1x32xf32> to vector<2x8x32xf32>
    %32 = arith.mulf %29, %31 : vector<2x8x32xf32>
    %33 = vector.shape_cast %3 : vector<1x32xf32> to vector<1x1x32xf32>
    %34 = vector.broadcast %33 : vector<1x1x32xf32> to vector<2x8x32xf32>
    %35 = arith.addf %32, %34 : vector<2x8x32xf32>
    %36 = vector.shape_cast %35 : vector<2x8x32xf32> to vector<16x32xf32>
    %c0_11 = arith.constant 0 : index
    %c0_12 = arith.constant 0 : index
    %37 = vector.load %arg4[%c0_11, %c0_12] : memref<16x16xf32, #tpu.memory_space<vmem>>, vector<16x16xf32>
    %cst_13 = arith.constant dense<0.000000e+00> : vector<16x32xf32>
    %38 = tpu.matmul %37, %36, %cst_13 {dimension_numbers = #tpu.dot_dimension_numbers<[1], [0], [0], [1], [0, 0, 1, 1], [], []>} : vector<16x16xf32>, vector<16x32xf32>, vector<16x32xf32> -> vector<16x32xf32>
    %39 = vector.shape_cast %38 : vector<16x32xf32> to vector<2x8x32xf32>
    %40 = vector.shape_cast %4 : vector<1x32xf32> to vector<1x1x32xf32>
    %41 = vector.broadcast %40 : vector<1x1x32xf32> to vector<2x8x32xf32>
    %42 = arith.addf %39, %41 : vector<2x8x32xf32>
    %43 = vector.shape_cast %5 : vector<1x32xf32> to vector<1x1x32xf32>
    %44 = vector.broadcast %43 : vector<1x1x32xf32> to vector<2x8x32xf32>
    %45 = arith.divf %42, %44 : vector<2x8x32xf32>
    %46 = vector.broadcast %27 : vector<2x1x32xf32> to vector<2x8x32xf32>
    %47 = arith.mulf %45, %46 : vector<2x8x32xf32>
    %48 = vector.broadcast %17 : vector<2x1x32xf32> to vector<2x8x32xf32>
    %49 = arith.addf %47, %48 : vector<2x8x32xf32>
    %50 = vector.shape_cast %49 : vector<2x8x32xf32> to vector<16x32xf32>
    %c0_14 = arith.constant 0 : index
    %c0_15 = arith.constant 0 : index
    %51 = vector.load %arg5[%c0_14, %c0_15] : memref<32x4xf32, #tpu.memory_space<vmem>>, vector<32x4xf32>
    %cst_16 = arith.constant dense<0.000000e+00> : vector<16x4xf32>
    %52 = tpu.matmul %50, %51, %cst_16 {dimension_numbers = #tpu.dot_dimension_numbers<[1], [0], [0], [1], [0, 0, 1, 1], [], []>} : vector<16x32xf32>, vector<32x4xf32>, vector<16x4xf32> -> vector<16x4xf32>
    %53 = vector.broadcast %6 : vector<1x4xf32> to vector<16x4xf32>
    %54 = arith.addf %52, %53 : vector<16x4xf32>
    %c0_17 = arith.constant 0 : index
    %c0_18 = arith.constant 0 : index
    %c0_19 = arith.constant 0 : index
    %55 = vector.load %arg6[%c0_17, %c0_18, %c0_19] : memref<1x16x4xf32, #tpu.memory_space<vmem>>, vector<1x16x4xf32>
    %56 = vector.shape_cast %55 : vector<1x16x4xf32> to vector<16x4xf32>
    %57 = vector.shape_cast %54 : vector<16x4xf32> to vector<1x16x4xf32>
    tpu.vector_store %arg6[%c0_17, %c0_18, %c0_19], %57 {strides = array<i32>} : memref<1x16x4xf32, #tpu.memory_space<vmem>>, vector<1x16x4xf32>,
    return
  }
  func.func @transform_0(%arg0: i32) -> (i32, i32, i32) {
    %c0_i32 = arith.constant 0 : i32
    %c0_i32_0 = arith.constant 0 : i32
    %c0_i32_1 = arith.constant 0 : i32
    return %arg0, %c0_i32, %c0_i32_0 : i32, i32, i32
  }
  func.func @transform_1(%arg0: i32) -> (i32, i32) {
    %c0_i32 = arith.constant 0 : i32
    %c0_i32_0 = arith.constant 0 : i32
    %c0_i32_1 = arith.constant 0 : i32
    return %c0_i32, %c0_i32_0 : i32, i32
  }
  func.func @transform_2(%arg0: i32) -> (i32, i32) {
    %c0_i32 = arith.constant 0 : i32
    %c0_i32_0 = arith.constant 0 : i32
    %c0_i32_1 = arith.constant 0 : i32
    return %c0_i32, %c0_i32_0 : i32, i32
  }
  func.func @transform_3(%arg0: i32) -> (i32, i32) {
    %c0_i32 = arith.constant 0 : i32
    %c0_i32_0 = arith.constant 0 : i32
    %c0_i32_1 = arith.constant 0 : i32
    return %c0_i32, %c0_i32_0 : i32, i32
  }
  func.func @transform_4(%arg0: i32) -> (i32, i32) {
    %c0_i32 = arith.constant 0 : i32
    %c0_i32_0 = arith.constant 0 : i32
    %c0_i32_1 = arith.constant 0 : i32
    return %c0_i32, %c0_i32_0 : i32, i32
  }
  func.func @transform_5(%arg0: i32) -> (i32, i32, i32) {
    %c0_i32 = arith.constant 0 : i32
    %c0_i32_0 = arith.constant 0 : i32
    %c0_i32_1 = arith.constant 0 : i32
    return %arg0, %c0_i32, %c0_i32_0 : i32, i32, i32
  }
}

</mosaic_0001>

<bundles_post_ra>
// kernel: film_forward.1
= control target key start
LH: loop header
LB: loop body
LE: loop exit
PB: predicated region body
PF: predicated region fallthrough
CT: control target
= control target key end

     0   :  { %vm28_vm0 = vcmask 64512   ;;  %vm182_vm1 = vcmask 130048   ;;  %v24_v4 = vlaneseq  ;;  %vm110_vm2 = vcmask 261120   ;;  %s539_s1 = inlined_call_operand.vmem [shape: f32[8,32], index: 1, kind: input, shape index: {}]   ;;  %s540_s0 = inlined_call_operand.vmem [shape: f32[2,8,8], index: 0, kind: input, shape index: {}]   ;;  %s541_s3 = inlined_call_operand.vmem [shape: f32[16,16], index: 3, kind: input, shape index: {}]   ;;  %s542_s2 = inlined_call_operand.vmem [shape: f32[8,32], index: 2, kind: input, shape index: {}]   ;;  %s543_s4 = inlined_call_operand.vmem [shape: f32[32,4], index: 4, kind: input, shape index: {}]   ;;  %s544_s5 = inlined_call_operand.vmem [shape: f32[1,16,4], index: 5, kind: output, shape index: {}]  }
   0x1   :  { %v23_v0 = vld [vmem:[%s539_s1] sm:$0xff]  ;;  %v22_v2 = vld [vmem:[%s540_s0 + $0x8] sm:$0xff]  ;;  %vm370_vm7 = vcmask 31744  }
   0x2   :  { %v21_v1 = vld [vmem:[%s540_s0] sm:$0xff]  ;;  %396 = vmatprep.subr.mxu1 %v23_v0  ;;  %v484_v5 = vshrl.u32 %v24_v4, 7 }
   0x3   :  { %398 = vmatprep.mubr.msk.f32.mxu1 %vm28_vm0, %v21_v1  ;;  %397 = vmatpush3.msra.mxu1 %v23_v0  ;;  %v180_v3 = vld [vmem:[%s541_s3] sm:$0xff] }
   0x4   :  { %399 = vmatmul.mubr.msk.f32.vlgmr.msra.gmra.mrb[0].mxu1 %vm28_vm0, %v22_v2  ;;  %v26_v6 = vsub.s32 0, %v484_v5  ;;  %v490_v7 = vld [vmem:[%s542_s2] sm:$0xff]  ;;  %v170_v61 = vsub.s32 1, %v484_v5  ;;  %v176_v62 = vsub.s32 2, %v484_v5 }
   0x5   :  { %405 = vmatprep.mubr.msk.f32.mxu1 %vm182_vm1, %v180_v3 }
   0x6   :  { %v27_v8 = vrot.slane %v490_v7, %v26_v6  ;;  %v171_v63 = vrot.slane %v490_v7, %v170_v61  ;;  %v177_v3 = vrot.slane %v490_v7, %v176_v62 }
  0xd7   :  { %v400_v9 = vpop.f32.mrb[0].mxu1 }
  0xd8   :  { %v107_v10 = vadd.f32 %v400_v9, %v27_v8  ;;  %v101_v11 = vpop.f32.mrb[1].mxu1 }
  0xd9   :  { %v102_v12 = vadd.f32 %v101_v11, %v27_v8 }
  0xda   :  { %v118_v13 = vsel %vm110_vm2, %v107_v10, 0.0 }
  0xdb   :  { %v119_v14 = vrot.slane %v118_v13, 4  ;;  %v111_v15 = vsel %vm110_vm2, %v102_v12, 0.0 }
  0xdc   :  { %v112_v16 = vrot.slane %v111_v15, 4 }
  0xdd   :  { %v120_v17 = vadd.f32 %v119_v14, %v118_v13  ;;  %v281_v13 = vld [vmem:[%s543_s4] sm:$0xff]  ;;  %v282_v14 = vld [vmem:[%s543_s4 + $0x8] sm:$0xff] }
  0xde   :  { %v113_v18 = vadd.f32 %v112_v16, %v111_v15  ;;  %v423_v15 = vpack.c.bf16 %v282_v14, %v281_v13  ;;  %v283_v16 = vld [vmem:[%s543_s4 + $0x10] sm:$0xff] }
  0xdf   :  { %v121_v19 = vrot.slane %v120_v17, 2 }
  0xe0   :  { %v114_v20 = vrot.slane %v113_v18, 2  ;;  %424 = vmatprep.subr.bf16.mxu0 %v423_v15 }
  0xe1   :  { %v122_v21 = vadd.f32 %v121_v19, %v120_v17  ;;  %426 = vmatpush3.bf16.msra.mxu0 %v423_v15  ;;  %v284_v17 = vld [vmem:[%s543_s4 + $0x18] sm:$0xff]  ;;  %v272_v19 = vsub.s32 4, %v484_v5 }
  0xe2   :  { %v115_v22 = vadd.f32 %v114_v20, %v113_v18  ;;  %v427_v18 = vpack.c.bf16 %v284_v17, %v283_v16 }
  0xe3   :  { %v123_v23 = vrot.slane %v122_v21, 1  ;;  %v273_v20 = vrot.slane %v490_v7, %v272_v19 }
  0xe4   :  { %v116_v24 = vrot.slane %v115_v22, 1  ;;  %428 = vmatprep.subr.bf16.mxu0 %v427_v18 }
  0xe5   :  { %v124_v25 = vadd.f32 %v123_v23, %v122_v21  ;;  %430 = vmatpush3.bf16.msra.mxu0 %v427_v18  ;;  %v266_v21 = vsub.s32 3, %v484_v5 }
  0xe6   :  { %v117_v26 = vadd.f32 %v116_v24, %v115_v22 }
  0xe7   :  { %v495_v27 = vmul.f32 0.125, %v124_v25  ;;  %v267_v22 = vrot.slane %v490_v7, %v266_v21 }
  0xe8   :  { %v497_v28 = vmul.f32 0.125, %v117_v26 }
  0xe9   :  { %v129_v29 = vsub.f32 %v107_v10, %v495_v27 }
  0xea   :  { %v128_v30 = vsub.f32 %v102_v12, %v497_v28  ;;  %v181_v12 = vld [vmem:[%s541_s3 + $0x8] sm:$0xff] }
  0xeb   :  { %v131_v31 = vmul.f32 %v129_v29, %v129_v29 }
  0xec   :  { %v130_v32 = vmul.f32 %v128_v30, %v128_v30 }
  0xed   :  { %v139_v33 = vsel %vm110_vm2, %v131_v31, 0.0 }
  0xee   :  { %v140_v34 = vrot.slane %v139_v33, 4  ;;  %v132_v35 = vsel %vm110_vm2, %v130_v32, 0.0 }
  0xef   :  { %v133_v36 = vrot.slane %v132_v35, 4 }
  0xf0   :  { %v141_v37 = vadd.f32 %v140_v34, %v139_v33 }
  0xf1   :  { %v134_v38 = vadd.f32 %v133_v36, %v132_v35  ;;  %v287_v36 = vsub.s32 5, %v484_v5 }
  0xf2   :  { %v142_v39 = vrot.slane %v141_v37, 2 }
  0xf3   :  { %v135_v40 = vrot.slane %v134_v38, 2 }
  0xf4   :  { %v143_v41 = vadd.f32 %v142_v39, %v141_v37  ;;  %v288_v37 = vrot.slane %v490_v7, %v287_v36 }
  0xf5   :  { %v136_v42 = vadd.f32 %v135_v40, %v134_v38 }
  0xf6   :  { %v144_v43 = vrot.slane %v143_v41, 1 }
  0xf7   :  { %v137_v44 = vrot.slane %v136_v42, 1 }
  0xf8   :  { %v145_v45 = vadd.f32 %v144_v43, %v143_v41 }
  0xf9   :  { %v138_v46 = vadd.f32 %v137_v44, %v136_v42 }
  0xfa   :  { %v147_v47 = vmul.f32 0.125, %v145_v45 }
  0xfb   :  { %v146_v48 = vmul.f32 0.125, %v138_v46 }
  0xfc   :  { %v149_v49 = vadd.f32 1e-05, %v147_v47 }
  0xfd   :  { %v148_v50 = vadd.f32 1e-05, %v146_v48 }
  0xfe   :  { %431 = vrsqrt.f32 %v149_v49  ;;  %vm159_vm3 = vcmp.eq.f32.partialorder %v149_v49, inf  ;;  %v162_v54 = vand.u32 2147483648, %v149_v49  ;;  %vm161_vm4 = vcmp.eq.f32.partialorder %v149_v49, 0.0 }
  0xff   :  { %433 = vrsqrt.f32 %v148_v50  ;;  %vm152_vm5 = vcmp.eq.f32.partialorder %v148_v50, inf  ;;  %v155_v57 = vand.u32 2147483648, %v148_v50  ;;  %vm154_vm6 = vcmp.eq.f32.partialorder %v148_v50, 0.0 }
 0x108   :  { %v432_v51 = vpop.eup %431 }
 0x109   :  { %v434_v52 = vpop.eup %433  ;;  %v158_v53 = vmul.f32 %v432_v51, %v149_v49 }
 0x10a   :  { %v151_v55 = vmul.f32 %v434_v52, %v148_v50 }
 0x10b   :  { %v160_v56 = vsel %vm159_vm3, %v149_v49, %v158_v53 }
 0x10c   :  { %v163_v58 = vsel %vm161_vm4, %v162_v54, %v160_v56  ;;  %v153_v59 = vsel %vm152_vm5, %v148_v50, %v151_v55 }
 0x10d   :  { %435 = vrcp.f32 %v163_v58  ;;  %v156_v60 = vsel %vm154_vm6, %v155_v57, %v153_v59 }
 0x10e   :  { %437 = vrcp.f32 %v156_v60 }
 0x10f   :  { %439 = vrcp.f32 %v273_v20 }
 0x117   :  { %v436_v0 = vpop.eup %435 }
 0x118   :  { %v438_v1 = vpop.eup %437  ;;  %v167_v2 = vmul.f32 %v436_v0, %v129_v29 }
 0x119   :  { %v165_v4 = vmul.f32 %v438_v1, %v128_v30  ;;  %v440_v23 = vpop.eup %439 }
 0x11a   :  { %v173_v6 = vmul.f32 %v171_v63, %v167_v2 }
 0x11b   :  { %v172_v8 = vmul.f32 %v171_v63, %v165_v4 }
 0x11c   :  { %v179_v9 = vadd.f32 %v177_v3, %v173_v6 }
 0x11d   :  { %v178_v10 = vadd.f32 %v177_v3, %v172_v8 }
 0x11f   :  { %v419_v11 = vpack.c.bf16 %v179_v9, %v178_v10 }
 0x121   :  { %420 = vmatprep.subr.bf16.mxu1 %v419_v11 }
 0x122   :  { %422 = vmatpush3.bf16.msra.mxu1 %v419_v11 }
 0x125   :  { %406 = vmatmul.mubr.msk.f32.vlgmr.msra.gmra.mrb[2].mxu1 %vm182_vm1, %v181_v12 }
 0x1f8   :  { %v407_v24 = vpop.f32.mrb[2].mxu1 }
 0x1f9   :  { %v269_v25 = vadd.f32 %v407_v24, %v267_v22  ;;  %v255_v26 = vpop.f32.mrb[3].mxu1 }
 0x1fa   :  { %v268_v29 = vadd.f32 %v267_v22, %v255_v26 }
 0x1fb   :  { %v276_v30 = vmul.f32 %v440_v23, %v269_v25 }
 0x1fc   :  { %v275_v31 = vmul.f32 %v440_v23, %v268_v29 }
 0x1fd   :  { %v278_v32 = vmul.f32 %v276_v30, %v163_v58 }
 0x1fe   :  { %v277_v33 = vmul.f32 %v275_v31, %v156_v60 }
 0x1ff   :  { %v280_v35 = vadd.f32 %v278_v32, %v495_v27 }
 0x200   :  { %v279_v34 = vadd.f32 %v277_v33, %v497_v28 }
 0x202   :  { %416 = vmatprep.mubr.msk.f32.mxu0 %vm110_vm2, %v279_v34 }
 0x203   :  { %417 = vmatmul.mubr.msk.f32.vlgmr.msra.gmra.mrb[0].mxu0 %vm110_vm2, %v280_v35 }
 0x2d6   :  { %v418_v38 = vpop.f32.mrb[0].mxu0 }
 0x2d7   :  { %v367_v39 = vadd.f32 %v418_v38, %v288_v37  ;;  %v361_v40 = vpop.f32.mrb[1].mxu0 }
 0x2d8   :  { %v362_v41 = vadd.f32 %v361_v40, %v288_v37 }
 0x2d9   :  { %372 = vst.msk [vmem:[%s544_s5 + $0x8] sm:$0xff] %vm370_vm7, %v367_v39 }
 0x2da   :  { %371 = vst.msk [vmem:[%s544_s5] sm:$0xff] %vm370_vm7, %v362_v41 }

</bundles_post_ra>
